<compile_context>
chip_gen: v5e
topology: v5e:2x2
jax: 0.10.0
libtpu: 0.0.40
codegen_flags: <defaults>
</compile_context>

<pallas_src>
import jax
import jax.numpy as jnp
from jax.experimental import pallas as pl
from jax.experimental.pallas import tpu as pltpu


def base_classifier_kernel(x_ref, w_big_ref, b_ext_ref, w_cls_ref, b_cls_ref,
                           out_ref, acc_ref):
    """Grid = (batch tiles, C*HW contraction tiles)."""
    k = pl.program_id(1)

    @pl.when(k == 0)
    def _init():
        acc_ref[...] = jnp.zeros_like(acc_ref)

    # Fused GAP + extractor Linear: partial contraction over this C*HW tile.
    # (pool is folded into w_big, so this is a single MXU pass per tile.)
    acc_ref[...] += jnp.dot(x_ref[...].astype(jnp.float32), w_big_ref[...],
                            preferred_element_type=jnp.float32)

    @pl.when(k == pl.num_programs(1) - 1)
    def _finalize():
        feat = jnp.maximum(acc_ref[...] + b_ext_ref[...], 0.0)     # (tn, Fp)
        logits = jnp.dot(feat, w_cls_ref[...],
                         preferred_element_type=jnp.float32)       # (tn, Kp)
        out_ref[...] = (logits + b_cls_ref[...]).astype(out_ref.dtype)


def _round_up(v, m):
    return ((v + m - 1) // m) * m


def base_classifier_forward(x, w_ext, b_ext, w_cls, b_cls, *, tn=128, tk=512):
    """x: (N, C, H, W) -> logits (N, nclasses) float32."""
    N, C, H, W = x.shape
    HW = H * W
    CHW = C * HW
    F = w_ext.shape[1]
    K = w_cls.shape[1]

    # Lane-dense padded feature / class dims.
    Fp = _round_up(F, 128)
    Kp = _round_up(K, 128)

    # Tile sizes; clamp to (padded) problem size. Keep x/w tiles small enough
    # that double-buffered tiles fit v7x's 64 MiB VMEM with plenty of headroom.
    tn = min(tn, _round_up(N, 8))
    Np = _round_up(N, tn)
    tk = min(tk, _round_up(CHW, 128))
    CHWp = _round_up(CHW, tk)

    # Flatten spatial dims and zero-pad (padding contributes 0 to the dot).
    x2d = jnp.pad(x.reshape(N, CHW), ((0, Np - N), (0, CHWp - CHW)))

    # Fold GAP into the extractor weight:
    #   x.reshape(N, C*HW) @ w_big == mean(x, axis=(H,W)) @ w_ext
    # with w_big[c*HW + h, f] = w_ext[c, f] / HW.
    w_big = jnp.repeat(w_ext.astype(jnp.float32) / HW, HW, axis=0)
    w_big = jnp.pad(w_big, ((0, CHWp - CHW), (0, Fp - F)))
    b_ext_p = jnp.pad(b_ext.astype(jnp.float32), (0, Fp - F)).reshape(1, Fp)
    w_cls_p = jnp.pad(w_cls.astype(jnp.float32), ((0, Fp - F), (0, Kp - K)))
    b_cls_p = jnp.pad(b_cls.astype(jnp.float32), (0, Kp - K)).reshape(1, Kp)

    grid = (Np // tn, CHWp // tk)

    xbytes = Np * CHWp * jnp.dtype(x.dtype).itemsize
    cost = pl.CostEstimate(
        flops=2 * Np * CHWp * Fp + 2 * Np * Fp * Kp,
        transcendentals=0,
        bytes_accessed=int(xbytes + CHWp * Fp * 4 + Fp * Kp * 4 + Np * Kp * 4),
    )

    out = pl.pallas_call(
        base_classifier_kernel,
        out_shape=jax.ShapeDtypeStruct((Np, Kp), jnp.float32),
        grid=grid,
        in_specs=[
            pl.BlockSpec((tn, tk), lambda i, k: (i, k)),   # x tile (pipelined)
            pl.BlockSpec((tk, Fp), lambda i, k: (k, 0)),   # fused GAP+extractor W
            pl.BlockSpec((1, Fp), lambda i, k: (0, 0)),    # extractor bias (resident)
            pl.BlockSpec((Fp, Kp), lambda i, k: (0, 0)),   # classifier W (resident)
            pl.BlockSpec((1, Kp), lambda i, k: (0, 0)),    # classifier bias (resident)
        ],
        out_specs=pl.BlockSpec((tn, Kp), lambda i, k: (i, 0)),
        scratch_shapes=[pltpu.VMEM((tn, Fp), jnp.float32)],
        compiler_params=pltpu.CompilerParams(
            dimension_semantics=("parallel", "arbitrary"),
            vmem_limit_bytes=32 * 1024 * 1024,
        ),
        cost_estimate=cost,
    )(x2d, w_big, b_ext_p, w_cls_p, b_cls_p)

    return out[:N, :K]


def init_params(key, in_channels, feature_dim, nclasses):
    """Deterministic init mimicking PyTorch nn.Linear defaults."""
    k1, k2, k3, k4 = jax.random.split(key, 4)
    bnd_ext = 1.0 / jnp.sqrt(in_channels)
    bnd_cls = 1.0 / jnp.sqrt(feature_dim)
    w_ext = jax.random.uniform(k1, (in_channels, feature_dim), jnp.float32,
                               -bnd_ext, bnd_ext)
    b_ext = jax.random.uniform(k2, (feature_dim,), jnp.float32, -bnd_ext, bnd_ext)
    w_cls = jax.random.uniform(k3, (feature_dim, nclasses), jnp.float32,
                               -bnd_cls, bnd_cls)
    b_cls = jax.random.uniform(k4, (nclasses,), jnp.float32, -bnd_cls, bnd_cls)
    return w_ext, b_ext, w_cls, b_cls


if __name__ == "__main__":
    # Small shapes consistent with the module's forward.
    N, C, H, W = 2, 4, 16, 16
    feature_dim = 32
    nclasses = 10

    key = jax.random.PRNGKey(0)
    kx, kp = jax.random.split(key)
    x = jax.random.normal(kx, (N, C, H, W), jnp.float32)
    w_ext, b_ext, w_cls, b_cls = init_params(kp, C, feature_dim, nclasses)

    logits = base_classifier_forward(x, w_ext, b_ext, w_cls, b_cls)
    jax.block_until_ready(logits)

    # Pure-JAX reference (same math: GAP -> Linear+ReLU -> Linear).
    pooled_ref = jnp.mean(x.reshape(N, C, H * W), axis=-1)
    feat_ref = jnp.maximum(pooled_ref @ w_ext + b_ext, 0.0)
    logits_ref = feat_ref @ w_cls + b_cls
    assert logits.shape == (N, nclasses)
    assert jnp.allclose(logits, logits_ref, atol=1e-3, rtol=1e-3), (
        float(jnp.max(jnp.abs(logits - logits_ref))))

    print("KERNEL_OK")
</pallas_src>

<mosaic_0001>
module attributes {stable_mosaic.version = 11 : i64} {
  func.func @base_classifier_kernel(%arg0: i32, %arg1: i32, %arg2: memref<8x512xf32, #tpu.memory_space<vmem>>, %arg3: memref<512x128xf32, #tpu.memory_space<vmem>>, %arg4: memref<1x128xf32, #tpu.memory_space<vmem>>, %arg5: memref<128x128xf32, #tpu.memory_space<vmem>>, %arg6: memref<1x128xf32, #tpu.memory_space<vmem>>, %arg7: memref<8x128xf32, #tpu.memory_space<vmem>>, %arg8: memref<8x128xf32, #tpu.memory_space<vmem>>) attributes {dimension_semantics = [#tpu.dimension_semantics<parallel>, #tpu.dimension_semantics<arbitrary>], iteration_bounds = array<i64: 1, 2>, scalar_prefetch = 0 : i64, scratch_operands = 1 : i64, tpu.core_type = #tpu.core_type<tc>, window_params = [{transform_indices = @transform_0, window_bounds = array<i64: 8, 512>}, {transform_indices = @transform_1, window_bounds = array<i64: 512, 128>}, {pipeline_mode = #tpu.pipeline_mode<synchronous>, transform_indices = @transform_2, window_bounds = array<i64: 1, 128>}, {pipeline_mode = #tpu.pipeline_mode<synchronous>, transform_indices = @transform_3, window_bounds = array<i64: 128, 128>}, {pipeline_mode = #tpu.pipeline_mode<synchronous>, transform_indices = @transform_4, window_bounds = array<i64: 1, 128>}, {transform_indices = @transform_5, window_bounds = array<i64: 8, 128>}]} {
    %c0_i32 = arith.constant 0 : i32
    %0 = arith.cmpi eq, %arg1, %c0_i32 : i32
    %1 = arith.extui %0 : i1 to i32
    %c0_i32_0 = arith.constant 0 : i32
    %2 = arith.cmpi ne, %1, %c0_i32_0 : i32
    scf.if %2 {
      %cst_9 = arith.constant 0.000000e+00 : f32
      %12 = vector.broadcast %cst_9 : f32 to vector<8x128xf32>
      %c0_10 = arith.constant 0 : index
      %c0_11 = arith.constant 0 : index
      %13 = vector.load %arg8[%c0_10, %c0_11] : memref<8x128xf32, #tpu.memory_space<vmem>>, vector<8x128xf32>
      tpu.vector_store %arg8[%c0_10, %c0_11], %12 {strides = array<i32>} : memref<8x128xf32, #tpu.memory_space<vmem>>, vector<8x128xf32>,
    } else {
    }
    %c0 = arith.constant 0 : index
    %c0_1 = arith.constant 0 : index
    %3 = vector.load %arg8[%c0, %c0_1] : memref<8x128xf32, #tpu.memory_space<vmem>>, vector<8x128xf32>
    %c0_2 = arith.constant 0 : index
    %c0_3 = arith.constant 0 : index
    %4 = vector.load %arg2[%c0_2, %c0_3] : memref<8x512xf32, #tpu.memory_space<vmem>>, vector<8x512xf32>
    %c0_4 = arith.constant 0 : index
    %c0_5 = arith.constant 0 : index
    %5 = vector.load %arg3[%c0_4, %c0_5] : memref<512x128xf32, #tpu.memory_space<vmem>>, vector<512x128xf32>
    %cst = arith.constant dense<0.000000e+00> : vector<8x128xf32>
    %6 = tpu.matmul %4, %5, %cst {dimension_numbers = #tpu.dot_dimension_numbers<[1], [0], [0], [1], [0, 0, 1, 1], [], []>} : vector<8x512xf32>, vector<512x128xf32>, vector<8x128xf32> -> vector<8x128xf32>
    %7 = arith.addf %3, %6 : vector<8x128xf32>
    %c0_6 = arith.constant 0 : index
    %c0_7 = arith.constant 0 : index
    %8 = vector.load %arg8[%c0_6, %c0_7] : memref<8x128xf32, #tpu.memory_space<vmem>>, vector<8x128xf32>
    tpu.vector_store %arg8[%c0_6, %c0_7], %7 {strides = array<i32>} : memref<8x128xf32, #tpu.memory_space<vmem>>, vector<8x128xf32>,
    %c1_i32 = arith.constant 1 : i32
    %9 = arith.cmpi eq, %arg1, %c1_i32 : i32
    %10 = arith.extui %9 : i1 to i32
    %c0_i32_8 = arith.constant 0 : i32
    %11 = arith.cmpi ne, %10, %c0_i32_8 : i32
    scf.if %11 {
      %c0_9 = arith.constant 0 : index
      %c0_10 = arith.constant 0 : index
      %12 = vector.load %arg8[%c0_9, %c0_10] : memref<8x128xf32, #tpu.memory_space<vmem>>, vector<8x128xf32>
      %c0_11 = arith.constant 0 : index
      %c0_12 = arith.constant 0 : index
      %13 = vector.load %arg4[%c0_11, %c0_12] : memref<1x128xf32, #tpu.memory_space<vmem>>, vector<1x128xf32>
      %14 = vector.broadcast %13 : vector<1x128xf32> to vector<8x128xf32>
      %15 = arith.addf %12, %14 : vector<8x128xf32>
      %cst_13 = arith.constant 0.000000e+00 : f32
      %16 = vector.broadcast %cst_13 : f32 to vector<8x128xf32>
      %17 = arith.maximumf %15, %16 : vector<8x128xf32>
      %c0_14 = arith.constant 0 : index
      %c0_15 = arith.constant 0 : index
      %18 = vector.load %arg5[%c0_14, %c0_15] : memref<128x128xf32, #tpu.memory_space<vmem>>, vector<128x128xf32>
      %cst_16 = arith.constant dense<0.000000e+00> : vector<8x128xf32>
      %19 = tpu.matmul %17, %18, %cst_16 {dimension_numbers = #tpu.dot_dimension_numbers<[1], [0], [0], [1], [0, 0, 1, 1], [], []>} : vector<8x128xf32>, vector<128x128xf32>, vector<8x128xf32> -> vector<8x128xf32>
      %c0_17 = arith.constant 0 : index
      %c0_18 = arith.constant 0 : index
      %20 = vector.load %arg6[%c0_17, %c0_18] : memref<1x128xf32, #tpu.memory_space<vmem>>, vector<1x128xf32>
      %21 = vector.broadcast %20 : vector<1x128xf32> to vector<8x128xf32>
      %22 = arith.addf %19, %21 : vector<8x128xf32>
      %c0_19 = arith.constant 0 : index
      %c0_20 = arith.constant 0 : index
      %23 = vector.load %arg7[%c0_19, %c0_20] : memref<8x128xf32, #tpu.memory_space<vmem>>, vector<8x128xf32>
      tpu.vector_store %arg7[%c0_19, %c0_20], %22 {strides = array<i32>} : memref<8x128xf32, #tpu.memory_space<vmem>>, vector<8x128xf32>,
    } else {
    }
    return
  }
  func.func @transform_0(%arg0: i32, %arg1: i32) -> (i32, i32) {
    %c0_i32 = arith.constant 0 : i32
    return %arg0, %arg1 : i32, i32
  }
  func.func @transform_1(%arg0: i32, %arg1: i32) -> (i32, i32) {
    %c0_i32 = arith.constant 0 : i32
    %c0_i32_0 = arith.constant 0 : i32
    return %arg1, %c0_i32 : i32, i32
  }
  func.func @transform_2(%arg0: i32, %arg1: i32) -> (i32, i32) {
    %c0_i32 = arith.constant 0 : i32
    %c0_i32_0 = arith.constant 0 : i32
    %c0_i32_1 = arith.constant 0 : i32
    return %c0_i32, %c0_i32_0 : i32, i32
  }
  func.func @transform_3(%arg0: i32, %arg1: i32) -> (i32, i32) {
    %c0_i32 = arith.constant 0 : i32
    %c0_i32_0 = arith.constant 0 : i32
    %c0_i32_1 = arith.constant 0 : i32
    return %c0_i32, %c0_i32_0 : i32, i32
  }
  func.func @transform_4(%arg0: i32, %arg1: i32) -> (i32, i32) {
    %c0_i32 = arith.constant 0 : i32
    %c0_i32_0 = arith.constant 0 : i32
    %c0_i32_1 = arith.constant 0 : i32
    return %c0_i32, %c0_i32_0 : i32, i32
  }
  func.func @transform_5(%arg0: i32, %arg1: i32) -> (i32, i32) {
    %c0_i32 = arith.constant 0 : i32
    %c0_i32_0 = arith.constant 0 : i32
    return %arg0, %c0_i32 : i32, i32
  }
}

</mosaic_0001>

<bundles_post_ra>
// kernel: tpu_custom_call.1
= control target key start
LH: loop header
LB: loop body
LE: loop exit
PB: predicated region body
PF: predicated region fallthrough
CT: control target
= control target key end

     0   :  { %s1159_s0 = inlined_call_operand.hbm [shape: f32[8,1024], index: 0, kind: input, shape index: {}]   ;;  %s1160_s1 = inlined_call_operand.hbm [shape: f32[1024,128], index: 1, kind: input, shape index: {}]   ;;  %s1161_s2 = inlined_call_operand.vmem [shape: f32[1,128], index: 2, kind: input, shape index: {}]   ;;  %s1162_s3 = inlined_call_operand.hbm [shape: f32[128,128], index: 3, kind: input, shape index: {}]   ;;  %s1163_s4 = inlined_call_operand.vmem [shape: f32[1,128], index: 4, kind: input, shape index: {}]   ;;  %s1164_s5 = inlined_call_operand.hbm [shape: f32[8,128], index: 5, kind: output, shape index: {}]  }
   0x1   :  { %1168 = sst [smem:[#allocation16_spill]] %s1162_s3 }
   0x2   :  { %10 = vsyncpa [#allocation4], 0 }
   0x3   :  { %12 = vsyncpa [#allocation4 + $0x1], 0 }
   0x4   :  { %13 = vsyncpa [#allocation7], 0 }
   0x5   :  { %15 = vsyncpa [#allocation7 + $0x1], 0 }
   0x6   :  { %16 = vsyncpa [#allocation5], 0  ;;  %s949_s18 = smov 0   ;;  %s951_s19 = smov 0  }
   0x7   :  { %s953_s20 = smov 0   ;;  %s955_s21 = smov 0  }
   0x8   :  { %s957_s22 = smov 0   ;;  %s959_s23 = smov 0  }
   0x9 LB: > { %s980_s24 = sadd.s32 4294967295, %s912_s23   ;;  %p628_p0 = scmp.ge.s32.totalorder %s912_s23, 1  ;;  %s912_s23 = sphi %s959_s23, %s22_s23   ;;  %s908_s22 = sphi %s957_s22, %s1183_s22   ;;  %s904_s21 = sphi %s955_s21, %s1182_s21   ;;  %s900_s20 = sphi %s953_s20, %s1181_s20   ;;  %s896_s19 = sphi %s951_s19, %s1180_s19   ;;  %s892_s18 = sphi %s949_s18, %s1179_s18  }
   0xa   : > { %p57_p1 = scmp.eq.s32.totalorder %s980_s24, 0  ;;  %p182_p2 = scmp.lt.s32.totalorder %s912_s23, 3 }
   0xb   : > { %s1169_s3 = sld [smem:[#allocation16_spill]]  ;;  %s914_s29 = smov [#allocation8]  }
   0xc   : > { %p988_p3 = pnand %p628_p0, %p182_p2  ;;  %s198_s30 = sshll.u32 %s914_s29, 4  ;;  %s199_s30 = int_to_ptr.vmem [resolvable:$true] %s198_s30 }
   0xd   : > { %s1165_s6 = smov 128   ;;  %s1166_s7 = smov 8  }
   0xe   : > { %p661_p4 = pneg %p988_p3  ;;  %s31_s8 = sadd.s32 1, %s908_s22 }
   0xf   : > { %p32_p6 = scmp.ge.s32.totalorder %s31_s8, 2  ;;  %s43_s9 = sadd.s32 1, %s900_s20 }
  0x10   : > { %p662_p5 = pnand %p661_p4, %p57_p1  ;;  %p50_p7 = scmp.ne.s32.totalorder %s900_s20, %s896_s19 }
  0x11   : > { %s196_s27 = sshll.u32 %s1169_s3, 4  ;;  %p51_p8 = scmp.eq.s32.totalorder %s912_s23, 0  ;;  %s197_s27 = int_to_ptr.hbm [resolvable:$true] %s196_s27 }
  0x12   : > { %664 = dma.hbm_to_vmem [thread:$0]  (!%p662_p5), %s197_s27, 2048, %s199_s30, [#allocation7], %s1165_s6, %s1165_s6, %s1166_s7  }
  0x13   : > { %s1185_s8 = smov (%p32_p6, %s31_s8), 0  ;;  %p1006_p9 = por %p51_p8, %p50_p7 }
  0x14   : > { %1171 = sst [smem:[#allocation14_spill]] %s1185_s8  ;;  %p56_p10 = scmp.ne.s32.totalorder %s896_s19, %s892_s18 }
  0x15   : > { %s39_s11 = ssub.s32 %s908_s22, %s1185_s8  ;;  %p673_p11 = scmp.lt.s32.totalorder %s912_s23, 2 }
  0x16   : > { %p41_p12 = scmp.eq.s32.totalorder %s39_s11, 0  ;;  %p1017_p13 = por %p57_p1, %p56_p10 }
  0x17   : > { %s215_s13 = sand.u32 1, %s900_s20   ;;  %s647_s14 = sshll.u32 %s908_s22, 5 }
  0x18   : > { %s1024_s15 = scalar_select %p41_p12, %s900_s20, %s43_s9  }
  0x19   : > { %s631_s16 = sshll.u32 %s215_s13, 5  ;;  %s226_s26 = scalar_lea.hbm %s1159_s0, %s647_s14 }
  0x1a   : > { %1174 = sst [smem:[#allocation15_spill]] %s1024_s15  ;;  %s228_s18 = sshll.u32 %s226_s26, 4  ;;  %s229_s18 = int_to_ptr.hbm [resolvable:$true] %s228_s18 }
  0x1b   : > { %s219_s27 = scalar_lea.vmem [#allocation3], %s631_s16  ;;  %p666_p0 = pnand %p673_p11, %p1006_p9 }
  0x1c   : > { %s230_s29 = sshll.u32 %s219_s27, 4  ;;  %s634_s30 = sshll.u32 %s215_s13, 9  ;;  %s231_s29 = int_to_ptr.vmem [resolvable:$true] %s230_s29 }
  0x1d   : > { %s648_s11 = sshll.u32 %s908_s22, 9  ;;  %s241_s6 = scalar_lea.vmem [#allocation6], %s634_s30 }
  0x1e   : > { %s249_s7 = sshll.u32 %s241_s6, 4  ;;  %s216_s9 = scalar_lea.sflag [#allocation4], %s215_s13  ;;  %s250_s7 = int_to_ptr.vmem [resolvable:$true] %s249_s7 }
  0x1f   : > { %668 = dma.hbm_to_vmem [thread:$0]  (!%p666_p0), %s229_s18, 512, %s231_s29, %s216_s9  }
  0x20   : > { %s237_s3 = sand.u32 1, %s912_s23   ;;  %s246_s14 = scalar_lea.hbm %s1160_s1, %s648_s11 }
  0x21   : > { %s247_s17 = sshll.u32 %s246_s14, 4  ;;  %s238_s16 = scalar_lea.sflag [#allocation7], %s237_s3  ;;  %s248_s17 = int_to_ptr.hbm [resolvable:$true] %s247_s17 }
  0x22   : > { %s1175_s25 = smov 8   ;;  %s1176_s26 = smov 128  }
  0x23   : > { %671 = dma.hbm_to_vmem [thread:$0]  (!%p666_p0), %s248_s17, 8192, %s250_s7, %s238_s16, %s1176_s26, %s1176_s26, %s1175_s25  }
  0x24   : > { %261 = sbr.rel (%p988_p3) target bundleno = 395 (0x18b), region = 40  ;;  %s263_s6 = sand.u32 (!%p988_p3), 1, %s896_s19  }
  0x25   : > { %s638_s10 = sshll.u32 (!%p988_p3), %s263_s6, 5  ;;  %s264_s13 = scalar_lea.sflag (!%p988_p3), [#allocation4], %s263_s6 }
  0x26   : > { %s1044_s18 = scalar_lea.vmem (!%p988_p3), [#allocation3], %s638_s10 }
  0x29   : > { %875 = dma.done.wait (%p1017_p13), %s264_s13, 512  }
  0x2a   : > { %877 = vsyncadd (%p1017_p13), %s264_s13, 4294966784  ;;  %s273_s3 = sand.u32 1, %s980_s24   ;;  %s639_s8 = sshll.u32 %s263_s6, 9 }
  0x2b   : > { %s274_s7 = scalar_lea.sflag [#allocation7], %s273_s3  ;;  %s1051_s15 = scalar_lea.vmem [#allocation6], %s639_s8 }
  0x2c   : > { %879 = dma.done.wait (%p1017_p13), %s274_s7, 8192  }
  0x2d   : > { %881 = vsyncadd (%p1017_p13), %s274_s7, 4294959104 }
  0x2e   : > { %883 = dma.done.wait (%p57_p1), [#allocation7], 2048  }
  0x2f   : > { %885 = vsyncadd (%p57_p1), [#allocation7], 4294965248  ;;  %p641_p2 = scmp.ne.s32.totalorder %s904_s21, 0 }
  0x31   : > { %315 = sbr.rel (%p641_p2) target bundleno = 56 (0x38), region = 56 }
  0x36   : > { %v917_v0 = vmov 0.0  }
  0x37   : > { %316 = vst [vmem:[#allocation2] sm:$0xff] %v917_v0 }
  0x38 PF: > { %v369_v1 = vld [vmem:[%s1051_s15 + $0x178] sm:$0xff]  ;;  %v368_v2 = vld [vmem:[%s1051_s15 + $0x170] sm:$0xff]  ;;  %v367_v6 = vld [vmem:[%s1051_s15 + $0x168] sm:$0xff]  ;;  %p642_p1 = scmp.ne.s32.totalorder %s904_s21, 1 }
  0x39   : > { %v385_v3 = vld [vmem:[%s1051_s15 + $0x1f8] sm:$0xff]  ;;  %426 = vmatpush.msra.mxu2 %v369_v1  ;;  %v384_v7 = vld [vmem:[%s1051_s15 + $0x1f0] sm:$0xff]  ;;  %v383_v10 = vld [vmem:[%s1051_s15 + $0x1e8] sm:$0xff] }
  0x3a   : > { %446 = vmatpush.msra.mxu3 %v385_v3  ;;  %v337_v4 = vld [vmem:[%s1051_s15 + $0x78] sm:$0xff]  ;;  %v336_v8 = vld [vmem:[%s1051_s15 + $0x70] sm:$0xff]  ;;  %v335_v11 = vld [vmem:[%s1051_s15 + $0x68] sm:$0xff] }
  0x3b   : > { %v353_v5 = vld [vmem:[%s1051_s15 + $0xf8] sm:$0xff]  ;;  %386 = vmatpush.msra.mxu0 %v337_v4  ;;  %v352_v9 = vld [vmem:[%s1051_s15 + $0xf0] sm:$0xff]  ;;  %427 = vmatpush.msra.mxu2 %v368_v2  ;;  %v366_v12 = vld [vmem:[%s1051_s15 + $0x160] sm:$0xff] }
  0x3c   : > { %406 = vmatpush.msra.mxu1 %v353_v5  ;;  %447 = vmatpush.msra.mxu3 %v384_v7  ;;  %v351_v13 = vld [vmem:[%s1051_s15 + $0xe8] sm:$0xff]  ;;  %v382_v14 = vld [vmem:[%s1051_s15 + $0x1e0] sm:$0xff]  ;;  %v365_v17 = vld [vmem:[%s1051_s15 + $0x158] sm:$0xff] }
  0x3d   : > { %387 = vmatpush.msra.mxu0 %v336_v8  ;;  %428 = vmatpush.msra.mxu2 %v367_v6  ;;  %v334_v15 = vld [vmem:[%s1051_s15 + $0x60] sm:$0xff]  ;;  %v381_v18 = vld [vmem:[%s1051_s15 + $0x1d8] sm:$0xff]  ;;  %v364_v21 = vld [vmem:[%s1051_s15 + $0x150] sm:$0xff] }
  0x3e   : > { %407 = vmatpush.msra.mxu1 %v352_v9  ;;  %448 = vmatpush.msra.mxu3 %v383_v10  ;;  %v350_v16 = vld [vmem:[%s1051_s15 + $0xe0] sm:$0xff]  ;;  %v333_v19 = vld [vmem:[%s1051_s15 + $0x58] sm:$0xff]  ;;  %v380_v22 = vld [vmem:[%s1051_s15 + $0x1d0] sm:$0xff] }
  0x3f   : > { %388 = vmatpush.msra.mxu0 %v335_v11  ;;  %429 = vmatpush.msra.mxu2 %v366_v12  ;;  %v349_v20 = vld [vmem:[%s1051_s15 + $0xd8] sm:$0xff]  ;;  %v332_v23 = vld [vmem:[%s1051_s15 + $0x50] sm:$0xff]  ;;  %v363_v25 = vld [vmem:[%s1051_s15 + $0x148] sm:$0xff] }
  0x40   : > { %408 = vmatpush.msra.mxu1 %v351_v13  ;;  %449 = vmatpush.msra.mxu3 %v382_v14  ;;  %v348_v24 = vld [vmem:[%s1051_s15 + $0xd0] sm:$0xff]  ;;  %v379_v26 = vld [vmem:[%s1051_s15 + $0x1c8] sm:$0xff]  ;;  %v362_v29 = vld [vmem:[%s1051_s15 + $0x140] sm:$0xff] }
  0x41   : > { %389 = vmatpush.msra.mxu0 %v334_v15  ;;  %430 = vmatpush.msra.mxu2 %v365_v17  ;;  %v331_v27 = vld [vmem:[%s1051_s15 + $0x48] sm:$0xff]  ;;  %v378_v30 = vld [vmem:[%s1051_s15 + $0x1c0] sm:$0xff]  ;;  %v361_v33 = vld [vmem:[%s1051_s15 + $0x138] sm:$0xff] }
  0x42   : > { %409 = vmatpush.msra.mxu1 %v350_v16  ;;  %450 = vmatpush.msra.mxu3 %v381_v18  ;;  %v347_v28 = vld [vmem:[%s1051_s15 + $0xc8] sm:$0xff]  ;;  %v330_v31 = vld [vmem:[%s1051_s15 + $0x40] sm:$0xff]  ;;  %v377_v34 = vld [vmem:[%s1051_s15 + $0x1b8] sm:$0xff] }
  0x43   : > { %390 = vmatpush.msra.mxu0 %v333_v19  ;;  %431 = vmatpush.msra.mxu2 %v364_v21  ;;  %v346_v32 = vld [vmem:[%s1051_s15 + $0xc0] sm:$0xff]  ;;  %v329_v35 = vld [vmem:[%s1051_s15 + $0x38] sm:$0xff]  ;;  %v360_v37 = vld [vmem:[%s1051_s15 + $0x130] sm:$0xff] }
  0x44   : > { %410 = vmatpush.msra.mxu1 %v349_v20  ;;  %451 = vmatpush.msra.mxu3 %v380_v22  ;;  %v345_v36 = vld [vmem:[%s1051_s15 + $0xb8] sm:$0xff]  ;;  %v376_v38 = vld [vmem:[%s1051_s15 + $0x1b0] sm:$0xff]  ;;  %v359_v41 = vld [vmem:[%s1051_s15 + $0x128] sm:$0xff] }
  0x45   : > { %391 = vmatpush.msra.mxu0 %v332_v23  ;;  %432 = vmatpush.msra.mxu2 %v363_v25  ;;  %v328_v39 = vld [vmem:[%s1051_s15 + $0x30] sm:$0xff]  ;;  %v375_v42 = vld [vmem:[%s1051_s15 + $0x1a8] sm:$0xff]  ;;  %v358_v45 = vld [vmem:[%s1051_s15 + $0x120] sm:$0xff] }
  0x46   : > { %411 = vmatpush.msra.mxu1 %v348_v24  ;;  %452 = vmatpush.msra.mxu3 %v379_v26  ;;  %v344_v40 = vld [vmem:[%s1051_s15 + $0xb0] sm:$0xff]  ;;  %v327_v43 = vld [vmem:[%s1051_s15 + $0x28] sm:$0xff]  ;;  %v374_v46 = vld [vmem:[%s1051_s15 + $0x1a0] sm:$0xff] }
  0x47   : > { %392 = vmatpush.msra.mxu0 %v331_v27  ;;  %433 = vmatpush.msra.mxu2 %v362_v29  ;;  %v343_v44 = vld [vmem:[%s1051_s15 + $0xa8] sm:$0xff]  ;;  %v326_v47 = vld [vmem:[%s1051_s15 + $0x20] sm:$0xff]  ;;  %v357_v49 = vld [vmem:[%s1051_s15 + $0x118] sm:$0xff] }
  0x48   : > { %412 = vmatpush.msra.mxu1 %v347_v28  ;;  %453 = vmatpush.msra.mxu3 %v378_v30  ;;  %v342_v48 = vld [vmem:[%s1051_s15 + $0xa0] sm:$0xff]  ;;  %v373_v50 = vld [vmem:[%s1051_s15 + $0x198] sm:$0xff]  ;;  %v356_v53 = vld [vmem:[%s1051_s15 + $0x110] sm:$0xff] }
  0x49   : > { %393 = vmatpush.msra.mxu0 %v330_v31  ;;  %434 = vmatpush.msra.mxu2 %v361_v33  ;;  %v325_v51 = vld [vmem:[%s1051_s15 + $0x18] sm:$0xff]  ;;  %v372_v54 = vld [vmem:[%s1051_s15 + $0x190] sm:$0xff]  ;;  %v355_v57 = vld [vmem:[%s1051_s15 + $0x108] sm:$0xff] }
  0x4a   : > { %413 = vmatpush.msra.mxu1 %v346_v32  ;;  %454 = vmatpush.msra.mxu3 %v377_v34  ;;  %v341_v52 = vld [vmem:[%s1051_s15 + $0x98] sm:$0xff]  ;;  %v324_v55 = vld [vmem:[%s1051_s15 + $0x10] sm:$0xff]  ;;  %v371_v58 = vld [vmem:[%s1051_s15 + $0x188] sm:$0xff] }
  0x4b   : > { %394 = vmatpush.msra.mxu0 %v329_v35  ;;  %435 = vmatpush.msra.mxu2 %v360_v37  ;;  %v340_v56 = vld [vmem:[%s1051_s15 + $0x90] sm:$0xff]  ;;  %v323_v59 = vld [vmem:[%s1051_s15 + $0x8] sm:$0xff]  ;;  %v354_v61 = vld [vmem:[%s1051_s15 + $0x100] sm:$0xff] }
  0x4c   : > { %414 = vmatpush.msra.mxu1 %v345_v36  ;;  %455 = vmatpush.msra.mxu3 %v376_v38  ;;  %v339_v60 = vld [vmem:[%s1051_s15 + $0x88] sm:$0xff]  ;;  %v370_v62 = vld [vmem:[%s1051_s15 + $0x180] sm:$0xff]  ;;  %v320_v63 = vld [vmem:[%s1044_s18 + $0x10] sm:$0xff] }
  0x4d   : > { %395 = vmatpush.msra.mxu0 %v328_v39  ;;  %436 = vmatpush.msra.mxu2 %v359_v41  ;;  %v321_v0 = vld [vmem:[%s1044_s18 + $0x18] sm:$0xff]  ;;  %v322_v1 = vld [vmem:[%s1051_s15] sm:$0xff]  ;;  %v319_v4 = vld [vmem:[%s1044_s18 + $0x8] sm:$0xff] }
  0x4e   : > { %415 = vmatpush.msra.mxu1 %v344_v40  ;;  %456 = vmatpush.msra.mxu3 %v375_v42  ;;  %v338_v2 = vld [vmem:[%s1051_s15 + $0x80] sm:$0xff]  ;;  %v317_v11 = vld [vmem:[#allocation2] sm:$0xff] }
  0x4f   : > { %396 = vmatpush.msra.mxu0 %v327_v43  ;;  %437 = vmatpush.msra.mxu2 %v358_v45  ;;  %v318_v3 = vld [vmem:[%s1044_s18] sm:$0xff] }
  0x50   : > { %416 = vmatpush.msra.mxu1 %v343_v44  ;;  %457 = vmatpush.msra.mxu3 %v374_v46 }
  0x51   : > { %397 = vmatpush.msra.mxu0 %v326_v47  ;;  %438 = vmatpush.msra.mxu2 %v357_v49 }
  0x52   : > { %417 = vmatpush.msra.mxu1 %v342_v48  ;;  %458 = vmatpush.msra.mxu3 %v373_v50 }
  0x53   : > { %398 = vmatpush.msra.mxu0 %v325_v51  ;;  %439 = vmatpush.msra.mxu2 %v356_v53 }
  0x54   : > { %418 = vmatpush.msra.mxu1 %v341_v52  ;;  %459 = vmatpush.msra.mxu3 %v372_v54 }
  0x55   : > { %399 = vmatpush.msra.mxu0 %v324_v55  ;;  %440 = vmatpush.msra.mxu2 %v355_v57 }
  0x56   : > { %419 = vmatpush.msra.mxu1 %v340_v56  ;;  %460 = vmatpush.msra.mxu3 %v371_v58 }
  0x57   : > { %400 = vmatpush.msra.mxu0 %v323_v59  ;;  %441 = vmatpush.msra.mxu2 %v354_v61 }
  0x58   : > { %420 = vmatpush.msra.mxu1 %v339_v60  ;;  %461 = vmatpush.msra.mxu3 %v370_v62 }
  0x59   : > { %442 = vmatmul.f32.vlgmr.msra.gmra.mxu2 %v320_v63  ;;  %462 = vmatmul.f32.vlgmr.msra.gmra.mxu3 %v321_v0 }
  0x5a   : > { %401 = vmatpush.msra.mxu0 %v322_v1  ;;  %421 = vmatpush.msra.mxu1 %v338_v2 }
  0x5b   : > { %402 = vmatmul.f32.vlgmr.msra.gmra.mxu0 %v318_v3  ;;  %422 = vmatmul.f32.vlgmr.msra.gmra.mxu1 %v319_v4 }
  0xd8   : > { %v403_v5 = vpop.f32.mrf.mxu0  ;;  %v423_v6 = vpop.f32.mrf.mxu1 }
  0xd9   : > { %v424_v7 = vadd.f32 %v423_v6, %v403_v5 }
  0xdc   : > { %v443_v8 = vpop.f32.mrf.mxu2  ;;  %v463_v9 = vpop.f32.mrf.mxu3 }
  0xdd   : > { %v444_v10 = vadd.f32 %v443_v8, %v424_v7 }
  0xdf   : > { %v464_v12 = vadd.f32 %v463_v9, %v444_v10  ;;  %471 = sbr.rel (%p642_p1) target bundleno = 389 (0x185), region = 60 }
  0xe1   : > { %v466_v13 = vadd.f32 %v464_v12, %v317_v11 }
  0xe3   : > { %467 = vst [vmem:[#allocation2] sm:$0xff] %v466_v13 }
  0xe4   : > { %v494_v14 = vld [vmem:[#allocation8 + $0x78] sm:$0xff]  ;;  %v493_v15 = vld [vmem:[#allocation8 + $0x70] sm:$0xff]  ;;  %v492_v16 = vld [vmem:[#allocation8 + $0x68] sm:$0xff] }
  0xe5   : > { %499 = vmatpush.msra.mxu0 %v494_v14  ;;  %v491_v17 = vld [vmem:[#allocation8 + $0x60] sm:$0xff]  ;;  %v490_v18 = vld [vmem:[#allocation8 + $0x58] sm:$0xff]  ;;  %v489_v19 = vld [vmem:[#allocation8 + $0x50] sm:$0xff] }
  0xe6   : > { %v488_v20 = vld [vmem:[#allocation8 + $0x48] sm:$0xff]  ;;  %v487_v21 = vld [vmem:[#allocation8 + $0x40] sm:$0xff]  ;;  %v486_v22 = vld [vmem:[#allocation8 + $0x38] sm:$0xff] }
  0xe7   : > { %500 = vmatpush.msra.mxu0 %v493_v15  ;;  %v485_v23 = vld [vmem:[#allocation8 + $0x30] sm:$0xff]  ;;  %v484_v24 = vld [vmem:[#allocation8 + $0x28] sm:$0xff]  ;;  %v483_v25 = vld [vmem:[#allocation8 + $0x20] sm:$0xff] }
  0xe8   : > { %v730_v26 = vld [vmem:[%s1161_s2] ss:$0 sm:$0xff]  ;;  %v481_v29 = vld [vmem:[#allocation8 + $0x10] sm:$0xff]  ;;  %v480_v31 = vld [vmem:[#allocation8 + $0x8] sm:$0xff] }
  0xe9   : > { %501 = vmatpush.msra.mxu0 %v492_v16  ;;  %v482_v28 = vld [vmem:[#allocation8 + $0x18] sm:$0xff]  ;;  %v479_v32 = vld [vmem:[#allocation8] sm:$0xff] }
  0xea   : > { %v472_v27 = vld [vmem:[#allocation2] sm:$0xff] }
  0xeb   : > { %502 = vmatpush.msra.mxu0 %v491_v17  ;;  %v477_v30 = vadd.f32 %v730_v26, %v472_v27  ;;  %v731_v34 = vld [vmem:[%s1163_s4] ss:$0 sm:$0xff] }
  0xed   : > { %503 = vmatpush.msra.mxu0 %v490_v18  ;;  %v478_v33 = vmax.f32 %v477_v30, 0.0 }
  0xef   : > { %504 = vmatpush.msra.mxu0 %v489_v19 }
  0xf1   : > { %505 = vmatpush.msra.mxu0 %v488_v20 }
  0xf3   : > { %506 = vmatpush.msra.mxu0 %v487_v21 }
  0xf5   : > { %507 = vmatpush.msra.mxu0 %v486_v22 }
  0xf7   : > { %508 = vmatpush.msra.mxu0 %v485_v23 }
  0xf9   : > { %509 = vmatpush.msra.mxu0 %v484_v24 }
  0xfb   : > { %510 = vmatpush.msra.mxu0 %v483_v25 }
  0xfd   : > { %511 = vmatpush.msra.mxu0 %v482_v28 }
  0xff   : > { %512 = vmatpush.msra.mxu0 %v481_v29 }
 0x101   : > { %513 = vmatpush.msra.mxu0 %v480_v31 }
 0x103   : > { %514 = vmatpush.msra.mxu0 %v479_v32 }
 0x104   : > { %515 = vmatmul.f32.vlgmr.msra.gmra.mxu0 %v478_v33 }
 0x181   : > { %v516_v35 = vpop.f32.mrf.mxu0 }
 0x182   : > { %v517_v36 = vadd.f32 %v731_v34, %v516_v35 }
 0x184   : > { %519 = vst [vmem:[#allocation9] sm:$0xff] %v517_v36 }
 0x185 PF: > { %p675_p3 = scmp.eq.s32.totalorder %s980_s24, 1  ;;  %s530_s11 = sshll.u32 %s1164_s5, 4  ;;  %s531_s11 = int_to_ptr.hbm [resolvable:$true] %s530_s11 }
 0x186   : > { %s918_s9 = smov [#allocation9]  }
 0x187   : > { %s528_s14 = sshll.u32 %s918_s9, 4  ;;  %s529_s14 = int_to_ptr.vmem [resolvable:$true] %s528_s14 }
 0x188   : > { %658 = dma.vmem_to_hbm [thread:$0]  (%p675_p3), %s529_s14, 128, %s531_s11, [#allocation5]  }
 0x189   : > { %887 = dma.done.wait (%p675_p3), [#allocation5], 128  }
 0x18a   : > { %889 = vsyncadd (%p675_p3), [#allocation5], 4294967168 }
 0x18b PF: > { %s22_s23 = sadd.s32 1, %s912_s23   ;;  %s1177_s17 = sld [smem:[#allocation15_spill]] }
 0x18c   : > { %p19_p4 = scmp.ge.s32.totalorder %s22_s23, 4   ;;  %s1178_s24 = sld [smem:[#allocation14_spill]] }
 0x18d   : > { %s1179_s18 = smov %s896_s19  ;;  %s1180_s19 = smov %s900_s20 }
 0x18e   : > { %s1182_s21 = smov %s908_s22  ;;  %21 = sbr.rel (!%p19_p4) target bundleno = 9 (0x9), region = 103 }
 0x191   : > { %s1181_s20 = smov %s1177_s17 }
 0x192   : > { %s1183_s22 = smov %s1178_s24 }
 0x193   :  { %544 = vsyncpa [#allocation4], 1 }
 0x194   :  { %546 = vsyncpa [#allocation4 + $0x1], 1 }
 0x195   :  { %547 = vsyncpa [#allocation7], 1 }
 0x196   :  { %549 = vsyncpa [#allocation7 + $0x1], 1 }
 0x197   :  { %550 = vsyncpa [#allocation5], 1 }
 0x198   :  { %552 = vsyncpa [#allocation5 + $0x1], 1 }

</bundles_post_ra>
